<compile_context>
chip_gen: v7x
topology: tpu7x:2x2x1
jax: 0.10.0
libtpu: 0.0.40
codegen_flags: <defaults>
</compile_context>

<pallas_src>
import functools

import jax
import jax.numpy as jnp
from jax.experimental import pallas as pl
from jax.experimental.pallas import tpu as pltpu


_FUSED_VMEM_BUDGET = 8 * 1024 * 1024    # fused single-pass path budget (bytes)
_TILE_F32_BUDGET = 2 * 1024 * 1024      # per-tile f32 budget for the tiled path
_MAX_THIN_TILE_F32 = 4 * 1024 * 1024    # even an 8-row tile above this -> bail
_VMEM_LIMIT = 32 * 1024 * 1024          # scoped VMEM limit (safe on v5e/v6e/v7x)


def _sublane_multiple(itemsize):
    # Packed sub-32-bit dtypes need a larger second-minor alignment.
    return {4: 8, 2: 16, 1: 32}.get(int(itemsize), 8)


def _fused_footprint(rows, cols, itemsize):
    """Rough VMEM bytes for the fused path: in + out tiles + one f32 copy."""
    sub = _sublane_multiple(itemsize)
    pr = pl.cdiv(rows, sub) * sub
    pc = pl.cdiv(cols, 128) * 128
    pr32 = pl.cdiv(rows, 8) * 8
    return pr * pc * itemsize * 2 + pr32 * pc * 4


# --------------------------------------------------------------------------
# Fused path: whole array resident in VMEM, single kernel, 2N HBM traffic.
# --------------------------------------------------------------------------
def _fused_center_kernel(x_ref, o_ref, *, inv_n):
    xf = x_ref[...].astype(jnp.float32)
    s = jnp.sum(xf, axis=1, keepdims=True)     # lane reduce   -> (R, 1)
    s = jnp.sum(s, axis=0, keepdims=True)      # sublane reduce -> (1, 1)
    mean = s * inv_n                           # 1/n is a compile-time constant
    o_ref[...] = (xf - mean).astype(o_ref.dtype)


def _centered_fused(x2, n):
    itemsize = jnp.dtype(x2.dtype).itemsize
    return pl.pallas_call(
        functools.partial(_fused_center_kernel, inv_n=1.0 / n),
        out_shape=jax.ShapeDtypeStruct(x2.shape, x2.dtype),
        in_specs=[pl.BlockSpec(memory_space=pltpu.MemorySpace.VMEM)],
        out_specs=pl.BlockSpec(memory_space=pltpu.MemorySpace.VMEM),
        compiler_params=pltpu.CompilerParams(vmem_limit_bytes=_VMEM_LIMIT),
        cost_estimate=pl.CostEstimate(
            flops=2 * n, transcendentals=0,
            bytes_accessed=2 * n * itemsize),
    )(x2)


# --------------------------------------------------------------------------
# Tiled two-pass path: pass 1 partial sums, pass 2 subtract.
# --------------------------------------------------------------------------
def _partial_sum_kernel(x_ref, acc_ref, *, rows, tm, tiles_per_core, needs_mask):
    t = pl.program_id(1)                       # reduction axis

    @pl.when(t == 0)                           # init keyed on the REDUCTION axis
    def _():
        acc_ref[...] = jnp.zeros_like(acc_ref)

    xf = x_ref[...].astype(jnp.float32)
    if needs_mask:
        gi = pl.program_id(0) * tiles_per_core + t
        valid = rows - gi * tm                 # rows still valid in this tile
        row_ids = jax.lax.broadcasted_iota(jnp.int32, xf.shape, 0)
        xf = jnp.where(row_ids < valid, xf, 0.0)

    # VPU-friendly reduction: vreg-aligned sublane-group adds into an (8, C)
    # accumulator; the single cross-lane (XLU) reduce happens in the wrapper.
    acc_ref[...] += xf.reshape(tm // 8, 8, xf.shape[-1]).sum(axis=0)


def _subtract_kernel(x_ref, mean_ref, o_ref):
    x = x_ref[...]
    m = mean_ref[0]                            # f32 scalar from SMEM
    dt = jnp.dtype(o_ref.dtype)
    if dt == jnp.dtype(jnp.float32):
        o_ref[...] = x - m
    elif dt == jnp.dtype(jnp.bfloat16):
        o_ref[...] = x - m.astype(jnp.bfloat16)    # native bf16 VPU (v6e/v7x)
    else:
        o_ref[...] = (x.astype(jnp.float32) - m).astype(o_ref.dtype)


def _centered_tiled(x2, n):
    rows, cols = x2.shape
    dtype = x2.dtype
    itemsize = jnp.dtype(dtype).itemsize
    sub = _sublane_multiple(itemsize)

    # Largest sublane-aligned row-tile whose f32 copy stays under the budget.
    tm = max(sub, (_TILE_F32_BUDGET // (cols * 4)) // sub * sub)
    tm = min(tm, (rows // sub) * sub)
    num_tiles = pl.cdiv(rows, tm)

    # Split pass 1 across both TensorCores on v7x; harmless on 1-TC chips.
    nc = 2 if (num_tiles >= 2 and num_tiles % 2 == 0) else 1
    tiles_per_core = num_tiles // nc
    needs_mask = (rows % tm) != 0

    # --- pass 1: per-core (8, cols) partial sums ------------------------------
    partial = pl.pallas_call(
        functools.partial(_partial_sum_kernel, rows=rows, tm=tm,
                          tiles_per_core=tiles_per_core, needs_mask=needs_mask),
        out_shape=jax.ShapeDtypeStruct((nc * 8, cols), jnp.float32),
        grid_spec=pltpu.PrefetchScalarGridSpec(
            num_scalar_prefetch=0,
            grid=(nc, tiles_per_core),
            in_specs=[pl.BlockSpec((tm, cols),
                                   lambda c, t: (c * tiles_per_core + t, 0))],
            out_specs=pl.BlockSpec((8, cols), lambda c, t: (c, 0)),
        ),
        compiler_params=pltpu.CompilerParams(
            dimension_semantics=("parallel", "arbitrary"),
            vmem_limit_bytes=_VMEM_LIMIT),
        cost_estimate=pl.CostEstimate(
            flops=n, transcendentals=0,
            bytes_accessed=n * itemsize + nc * 8 * cols * 4),
    )(x2)

    # Tiny cross-lane reduce + mean with the TRUE element count (1/n static).
    mean = (jnp.sum(partial) * (1.0 / n)).reshape(1).astype(jnp.float32)

    # --- pass 2: x - mean, lane-dense tiles, fully parallel -------------------
    out = pl.pallas_call(
        _subtract_kernel,
        out_shape=jax.ShapeDtypeStruct(x2.shape, dtype),
        grid_spec=pltpu.PrefetchScalarGridSpec(
            num_scalar_prefetch=0,
            grid=(num_tiles,),
            in_specs=[
                pl.BlockSpec((tm, cols), lambda i: (i, 0)),
                pl.BlockSpec(memory_space=pltpu.MemorySpace.SMEM),   # mean (1,)
            ],
            out_specs=pl.BlockSpec((tm, cols), lambda i: (i, 0)),
        ),
        compiler_params=pltpu.CompilerParams(
            dimension_semantics=("parallel",),
            vmem_limit_bytes=_VMEM_LIMIT),
        cost_estimate=pl.CostEstimate(
            flops=n, transcendentals=0,
            bytes_accessed=2 * n * itemsize + 4),
    )(x2, mean)
    return out


# --------------------------------------------------------------------------
# Public wrapper = CenteredLayer.forward
# --------------------------------------------------------------------------
def centered_layer(x, *, min_kernel_elems=1 << 15, force_tiled=False):
    """PyTorch CenteredLayer.forward: X - X.mean() over all elements."""
    n = x.size
    if n == 0 or (not force_tiled and n < min_kernel_elems):
        # Tiny inputs: kernel-launch overhead dwarfs the work; use plain XLA.
        return x - jnp.mean(x)

    orig_shape = x.shape
    # Collapse to 2D with a free, contiguous reshape (no data movement).
    x2 = x.reshape(-1, x.shape[-1]) if x.ndim >= 2 else x.reshape(1, -1)
    rows, cols = x2.shape
    itemsize = jnp.dtype(x.dtype).itemsize
    sub = _sublane_multiple(itemsize)

    if (not force_tiled
            and _fused_footprint(rows, cols, itemsize) <= _FUSED_VMEM_BUDGET):
        return _centered_fused(x2, n).reshape(orig_shape)

    if rows < sub or sub * cols * 4 > _MAX_THIN_TILE_F32:
        # Re-factor the flat data into a lane-dense slab when that is a free,
        # pad-free contiguous reshape (covers large 1-D / single-fat-row cases).
        if n % 512 == 0 and (n // 512) >= sub:
            slab = x.reshape(n // 512, 512)
            return _centered_tiled(slab, n).reshape(orig_shape)
        # TODO(synk): truly ragged pathological shapes would need a padded-slab
        # re-tiling path; fall back to plain XLA there.
        return x - jnp.mean(x)

    return _centered_tiled(x2, n).reshape(orig_shape)


if __name__ == "__main__":
    key = jax.random.PRNGKey(0)
    k_small, k_med = jax.random.split(key)

    # The module's own example: X = torch.rand(2, 20)  -> fused Pallas path.
    x_small = jax.random.uniform(k_small, (2, 20), dtype=jnp.float32)
    out_small = jax.block_until_ready(centered_layer(x_small, min_kernel_elems=0))
    ref_small = x_small - jnp.mean(x_small)
    assert out_small.shape == x_small.shape and out_small.dtype == x_small.dtype
    assert jnp.allclose(out_small, ref_small, atol=1e-6), "fused-path mismatch"

    # Small multi-tile case exercising the tiled two-pass path
    # (ragged last row-tile -> in-kernel masking, 2-way reduction split).
    x_med = jax.random.uniform(k_med, (300, 160), dtype=jnp.float32)
    out_med = jax.block_until_ready(
        centered_layer(x_med, min_kernel_elems=0, force_tiled=True))
    ref_med = x_med - jnp.mean(x_med)
    assert out_med.shape == x_med.shape and out_med.dtype == x_med.dtype
    assert jnp.allclose(out_med, ref_med, atol=1e-5), "tiled-path mismatch"

    # Default behaviour: tiny inputs skip Pallas entirely (XLA fast path).
    out_fallback = jax.block_until_ready(centered_layer(x_small))
    assert jnp.allclose(out_fallback, ref_small, atol=1e-6), "fallback mismatch"

    print("KERNEL_OK")
</pallas_src>

<mosaic_0001>
module attributes {stable_mosaic.version = 11 : i64} {
  func.func @_fused_center_kernel(%arg0: memref<2x20xf32, #tpu.memory_space<vmem>>, %arg1: memref<2x20xf32, #tpu.memory_space<vmem>>) attributes {dimension_semantics = [], scalar_prefetch = 0 : i64, scratch_operands = 0 : i64, tpu.core_type = #tpu.core_type<tc>} {
    %c0 = arith.constant 0 : index
    %c0_0 = arith.constant 0 : index
    %0 = vector.load %arg0[%c0, %c0_0] : memref<2x20xf32, #tpu.memory_space<vmem>>, vector<2x20xf32>
    %cst = arith.constant dense<0.000000e+00> : vector<2xf32>
    %1 = vector.multi_reduction <add>, %0, %cst [1] : vector<2x20xf32> to vector<2xf32>
    %2 = vector.shape_cast %1 : vector<2xf32> to vector<2x1xf32>
    %cst_1 = arith.constant dense<0.000000e+00> : vector<1xf32>
    %3 = vector.multi_reduction <add>, %2, %cst_1 [0] : vector<2x1xf32> to vector<1xf32>
    %4 = vector.shape_cast %3 : vector<1xf32> to vector<1x1xf32>
    %cst_2 = arith.constant 2.500000e-02 : f32
    %5 = vector.broadcast %cst_2 : f32 to vector<1x1xf32>
    %6 = arith.mulf %4, %5 : vector<1x1xf32>
    %7 = vector.broadcast %6 : vector<1x1xf32> to vector<2x20xf32>
    %8 = arith.subf %0, %7 : vector<2x20xf32>
    %c0_3 = arith.constant 0 : index
    %c0_4 = arith.constant 0 : index
    %9 = vector.load %arg1[%c0_3, %c0_4] : memref<2x20xf32, #tpu.memory_space<vmem>>, vector<2x20xf32>
    tpu.vector_store %arg1[%c0_3, %c0_4], %8 {strides = array<i32>} : memref<2x20xf32, #tpu.memory_space<vmem>>, vector<2x20xf32>,
    return
  }
}

</mosaic_0001>

<bundles_post_ra>
// kernel: tpu_custom_call.1
= control target key start
LH: loop header
LB: loop body
LE: loop exit
PB: predicated region body
PF: predicated region fallthrough
CT: control target
= control target key end

     0   :  { %6 = vsyncpa [#allocation3], 0  ;;  %s140_s0 = inlined_call_operand.hbm [shape: f32[2,20], index: 0, kind: input, shape index: {}]   ;;  %s141_s1 = inlined_call_operand.hbm [shape: f32[2,20], index: 1, kind: output, shape index: {}]  }
   0x1   :  { %7 = vsyncpa [#allocation4], 0  ;;  %s102_s6 = smov [#allocation2]   ;;  %s54_s10 = scalar_lea.hbm %s140_s0, 32 }
   0x2   :  { %s14_s7 = sshll.u32 %s102_s6, 4  ;;  %p55_p0 = scmp.ne.s32.totalorder %s140_s0, %s54_s10  ;;  %s15_s7 = int_to_ptr.vmem [resolvable:$true] %s14_s7 }
   0x3   :  { %p58_p1 = scmp.lt.u32.totalorder %s54_s10, %s140_s0 }
   0x5   :  { %p60_p2 = pnand %p58_p1, %p55_p0 }
   0x7   :  { %63 = shalt.err (!%p60_p2)
}
   0x8   :  { %s64_s15 = scalar_lea.vmem %s15_s7, 32  ;;  %p69_p4 = scmp.lt.s32.totalorder %s15_s7, %s15_s7 }
   0x9   :  { %p65_p3 = scmp.ne.s32.totalorder %s15_s7, %s64_s15  ;;  %p70_p5 = scmp.lt.s32.totalorder %s64_s15, %s64_s15 }
   0xb   :  { %p71_p6 = por %p70_p5, %p69_p4 }
   0xd   :  { %p72_p7 = pnand %p71_p6, %p65_p3 }
   0xf   :  { %75 = shalt.err (!%p72_p7)
}
  0x10   :  { %17 = dma.hbm_to_vmem [thread:$0]  %s140_s0, 32, %s15_s7, [#allocation3]  }
  0x11   :  { %98 = dma.done.wait [#allocation3], 32  }
  0x12   :  { %99 = vsyncadd [#allocation3], 4294967264  ;;  %vm22_vm0 = vcmask 156672   ;;  %v21_v0 = vld [vmem:[#allocation2] sm:$0x3]  ;;  %vm26_vm1 = vcmask 1041408  }
  0x13   :  { %v23_v1 = vsel %vm22_vm0, %v21_v0, 0.0  ;;  %s103_s18 = smov [#allocation5]  }
  0x14   :  { %24 = vadd.xlane.f32.xlu0 %v23_v1  ;;  %s43_s19 = sshll.u32 %s103_s18, 4  ;;  %s44_s19 = int_to_ptr.vmem [resolvable:$true] %s43_s19 }
  0x15   :  { %s76_s0 = scalar_lea.vmem %s44_s19, 32  ;;  %p81_p9 = scmp.lt.s32.totalorder %s44_s19, %s44_s19 }
  0x16   :  { %p77_p8 = scmp.ne.s32.totalorder %s44_s19, %s76_s0  ;;  %p82_p10 = scmp.lt.s32.totalorder %s76_s0, %s76_s0 }
  0x18   :  { %p83_p11 = por %p82_p10, %p81_p9 }
  0x1a   :  { %p84_p12 = pnand %p83_p11, %p77_p8 }
  0xa1   :  { %v25_v2 = vpop.xlane.xlu0 %24 }
  0xa2   :  { %v27_v3 = vsel %vm26_vm1, %v25_v2, 0.0 }
  0xa3   :  { %v28_v4 = vrot.slane %v27_v3, 4 }
  0xa5   :  { %v29_v5 = vadd.f32 %v28_v4, %v27_v3 }
  0xa7   :  { %v30_v6 = vrot.slane %v29_v5, 2 }
  0xa9   :  { %v31_v7 = vadd.f32 %v30_v6, %v29_v5 }
  0xab   :  { %v32_v8 = vrot.slane %v31_v7, 1 }
  0xad   :  { %v33_v9 = vadd.f32 %v32_v8, %v31_v7 }
  0xaf   :  { %v34_v10 = vmul.f32 0.025, %v33_v9 }
  0xb1   :  { %v35_v11 = vsub.f32 %v21_v0, %v34_v10 }
  0xb3   :  { %36 = vst.msk [vmem:[#allocation5] sm:$0x3] %vm22_vm0, %v35_v11 }
  0xb4   :  { %87 = shalt.err (!%p84_p12)
}
  0xb5   :  { %s88_s22 = scalar_lea.hbm %s141_s1, 32 }
  0xb6   :  { %p89_p13 = scmp.ne.s32.totalorder %s141_s1, %s88_s22  ;;  %p92_p0 = scmp.lt.u32.totalorder %s88_s22, %s141_s1 }
  0xb8   :  { %p94_p1 = pnand %p92_p0, %p89_p13 }
  0xba   :  { %97 = shalt.err (!%p94_p1)
}
  0xbb   :  { %46 = dma.vmem_to_hbm [thread:$0]  %s44_s19, 32, %s141_s1, [#allocation4]  }
  0xbc   :  { %100 = dma.done.wait [#allocation4], 32  }
  0xbd   :  { %101 = vsyncadd [#allocation4], 4294967264 }
  0xbe   :  { %50 = vsyncpa [#allocation3], 1 }
  0xbf   :  { %51 = vsyncpa [#allocation4], 1 }

</bundles_post_ra>
